<compile_context>
chip_gen: v5e
topology: v5e:2x2
jax: 0.10.0
libtpu: 0.0.40
codegen_flags: <defaults>
</compile_context>

<pallas_src>
import jax
import jax.numpy as jnp
from jax.experimental import pallas as pl
from jax.experimental.pallas import tpu as pltpu


def _mish_kernel(x_ref, o_ref):
    xf = x_ref[...].astype(jnp.float32)
    t = jnp.exp(-jnp.abs(xf))            # single EUP transcendental per element
    t2 = t * t
    pos = xf >= 0.0
    two_t = t + t
    num = jnp.where(pos, 1.0 + two_t, two_t + t2)
    den = num + jnp.where(pos, t2 + t2, 2.0)   # one select, no polynomial recompute
    # Exact divide keeps us inside the 2e-5 tolerance vs the torch reference.
    # TODO(synk): if bf16 I/O on v7x ever profiles VALU-bound, switch to
    # num * pl.reciprocal(den, approx=True) and loosen the tolerance.
    o_ref[...] = (xf * (num / den)).astype(o_ref.dtype)


def _mish_ref_jnp(x):
    xf = x.astype(jnp.float32)
    sp = jnp.maximum(xf, 0.0) + jnp.log1p(jnp.exp(-jnp.abs(xf)))
    return (xf * jnp.tanh(sp)).astype(x.dtype)


def _round_up(v, m):
    return (v + m - 1) // m * m


def _round_down(v, m):
    return v // m * m


def _chip_params():
    """Returns (target_block_bytes, vmem_limit_bytes_or_None, tensorcores_per_chip)."""
    kind = ""
    try:
        kind = jax.devices()[0].device_kind.lower()
    except Exception:
        pass
    if "v7" in kind or "7x" in kind:
        # ~3.2 TB/s HBM: larger blocks amortize the fixed per-step cost.
        # Peak double-buffered in+out = 4 x 6 MiB = 24 MiB; raise limit with headroom.
        return 6 * 1024 * 1024, 44 << 20, 2
    if "v6" in kind:
        # 4 x 4 MiB = 16 MiB peak, inside the 32 MiB default scoped-VMEM limit.
        return 4 * 1024 * 1024, None, 1
    # v5e and older / unknown: 4 x 2 MiB = 8 MiB peak, inside 16 MiB default.
    return 2 * 1024 * 1024, None, 1


def _mish_flat_pallas(x_flat):
    """Elementwise Mish on a 1-D array whose size is a multiple of 128."""
    n = x_flat.shape[0]
    dtype = x_flat.dtype
    itemsize = jnp.dtype(dtype).itemsize
    target_bytes, vmem_limit, num_tc = _chip_params()

    # Widest slab width W (multiple of 128) dividing n -> zero-copy reshape.
    W = 128
    for cand in (8192, 4096, 2048, 1024, 512, 256):
        if n % cand == 0:
            W = cand
            break
    rows = n // W
    x2d = x_flat.reshape(rows, W)

    # Dtype-aware min-tile sublane: 8 (f32), 16 (bf16), 32 (int8/fp8).
    sublane = max(8, 32 // itemsize)
    target_rows = max(sublane,
                      _round_down(max(target_bytes // (W * itemsize), sublane), sublane))

    if rows <= sublane:
        block_rows = rows                                   # full extent, single block
    elif num_tc >= 2:
        # Keep >= 2 blocks so both v7x TensorCores get work.
        block_rows = min(target_rows, _round_up(pl.cdiv(rows, 2), sublane))
    elif rows <= target_rows:
        block_rows = rows                                   # single full-extent block
    else:
        block_rows = target_rows
    if block_rows >= rows:
        block_rows = rows                                   # full extent -> constraint waived

    steps = pl.cdiv(rows, block_rows)
    # v7x dual-TC balance: prefer an even step count on small grids.
    if num_tc >= 2 and 1 < steps <= 16 and steps % 2 == 1:
        cand_rows = _round_up(pl.cdiv(rows, steps + 1), sublane)
        cand_steps = pl.cdiv(rows, cand_rows)
        if cand_steps % 2 == 0:
            block_rows, steps = cand_rows, cand_steps

    cp_kwargs = dict(dimension_semantics=("parallel",))
    if vmem_limit is not None:
        cp_kwargs["vmem_limit_bytes"] = vmem_limit

    out2d = pl.pallas_call(
        _mish_kernel,
        out_shape=jax.ShapeDtypeStruct((rows, W), dtype),
        grid=(steps,),
        in_specs=[pl.BlockSpec((block_rows, W), lambda i: (i, 0))],
        out_specs=pl.BlockSpec((block_rows, W), lambda i: (i, 0)),
        compiler_params=pltpu.CompilerParams(**cp_kwargs),
    )(x2d)
    return out2d.reshape(n)


@jax.jit
def mish(x: jax.Array) -> jax.Array:
    """Elementwise Mish. Accepts any shape (e.g. NCHW); returns same shape/dtype."""
    n = x.size
    if n == 0:
        return x
    orig_shape = x.shape
    flat = x.reshape(n)

    lane = 128
    prefix = (n // lane) * lane
    if prefix == 0:
        # Fewer than 128 elements: not worth a kernel launch.
        return _mish_ref_jnp(x)
    if prefix == n:
        return _mish_flat_pallas(flat).reshape(orig_shape)
    # Ragged size: tuned Pallas kernel on the lane-aligned prefix, jnp on the
    # small (<128 element) tail.
    head = _mish_flat_pallas(flat[:prefix])
    tail = _mish_ref_jnp(flat[prefix:])
    return jnp.concatenate([head, tail]).reshape(orig_shape)


if __name__ == "__main__":
    key = jax.random.PRNGKey(0)

    def ref_f32(x):
        xf = x.astype(jnp.float32)
        sp = jnp.maximum(xf, 0.0) + jnp.log1p(jnp.exp(-jnp.abs(xf)))
        return xf * jnp.tanh(sp)

    def check(x, tol):
        y = mish(x)
        jax.block_until_ready(y)
        assert y.shape == x.shape and y.dtype == x.dtype
        err = float(jnp.max(jnp.abs(y.astype(jnp.float32) - ref_f32(x))))
        assert err < tol, err

    keys = jax.random.split(key, 4)
    # Small NCHW input consistent with conv-block usage (single-block path).
    check(jax.random.normal(keys[0], (2, 4, 16, 16), dtype=jnp.float32), 2e-5)
    # Larger NCHW input exercising the multi-block / masked-last-block / dual-TC path.
    check(jax.random.normal(keys[1], (2, 8, 40, 40), dtype=jnp.float32), 2e-5)
    # bf16 path (dtype-aware sublane rounding).
    check(jax.random.normal(keys[2], (2, 4, 16, 16)).astype(jnp.bfloat16), 3e-2)
    # Ragged size (not a multiple of 128): Pallas prefix + jnp tail.
    check(jax.random.normal(keys[3], (2, 3, 5, 7), dtype=jnp.float32), 2e-5)

    print("KERNEL_OK")
</pallas_src>

<mosaic_0001>
module attributes {stable_mosaic.version = 11 : i64} {
  func.func @_mish_kernel(%arg0: i32, %arg1: memref<1x2048xf32, #tpu.memory_space<vmem>>, %arg2: memref<1x2048xf32, #tpu.memory_space<vmem>>) attributes {dimension_semantics = [#tpu.dimension_semantics<parallel>], iteration_bounds = array<i64: 1>, scalar_prefetch = 0 : i64, scratch_operands = 0 : i64, tpu.core_type = #tpu.core_type<tc>, window_params = [{transform_indices = @transform_0, window_bounds = array<i64: 1, 2048>}, {transform_indices = @transform_1, window_bounds = array<i64: 1, 2048>}]} {
    %c0 = arith.constant 0 : index
    %c0_0 = arith.constant 0 : index
    %0 = vector.load %arg1[%c0, %c0_0] : memref<1x2048xf32, #tpu.memory_space<vmem>>, vector<1x2048xf32>
    %1 = math.absf %0 : vector<1x2048xf32>
    %cst = arith.constant 0.000000e+00 : f32
    %2 = vector.broadcast %cst : f32 to vector<1x2048xf32>
    %3 = arith.subf %2, %1 : vector<1x2048xf32>
    %4 = math.exp %3 : vector<1x2048xf32>
    %5 = arith.mulf %4, %4 : vector<1x2048xf32>
    %cst_1 = arith.constant 0.000000e+00 : f32
    %6 = vector.broadcast %cst_1 : f32 to vector<1x2048xf32>
    %7 = arith.cmpf oge, %0, %6 : vector<1x2048xf32>
    %8 = arith.addf %4, %4 : vector<1x2048xf32>
    %cst_2 = arith.constant 1.000000e+00 : f32
    %9 = vector.broadcast %cst_2 : f32 to vector<1x2048xf32>
    %10 = arith.addf %9, %8 : vector<1x2048xf32>
    %11 = arith.addf %8, %5 : vector<1x2048xf32>
    %12 = arith.select %7, %10, %11 : vector<1x2048xi1>, vector<1x2048xf32>
    %13 = arith.addf %5, %5 : vector<1x2048xf32>
    %cst_3 = arith.constant 2.000000e+00 : f32
    %14 = vector.broadcast %cst_3 : f32 to vector<1x2048xf32>
    %15 = arith.select %7, %13, %14 : vector<1x2048xi1>, vector<1x2048xf32>
    %16 = arith.addf %12, %15 : vector<1x2048xf32>
    %17 = arith.divf %12, %16 : vector<1x2048xf32>
    %18 = arith.mulf %0, %17 : vector<1x2048xf32>
    %c0_4 = arith.constant 0 : index
    %c0_5 = arith.constant 0 : index
    %19 = vector.load %arg2[%c0_4, %c0_5] : memref<1x2048xf32, #tpu.memory_space<vmem>>, vector<1x2048xf32>
    tpu.vector_store %arg2[%c0_4, %c0_5], %18 {strides = array<i32>} : memref<1x2048xf32, #tpu.memory_space<vmem>>, vector<1x2048xf32>,
    return
  }
  func.func @transform_0(%arg0: i32) -> (i32, i32) {
    %c0_i32 = arith.constant 0 : i32
    %c0_i32_0 = arith.constant 0 : i32
    return %arg0, %c0_i32 : i32, i32
  }
  func.func @transform_1(%arg0: i32) -> (i32, i32) {
    %c0_i32 = arith.constant 0 : i32
    %c0_i32_0 = arith.constant 0 : i32
    return %arg0, %c0_i32 : i32, i32
  }
}

</mosaic_0001>

<bundles_post_ra>
// kernel: mish.1
= control target key start
LH: loop header
LB: loop body
LE: loop exit
PB: predicated region body
PF: predicated region fallthrough
CT: control target
= control target key end

     0   :  { %s114_s0 = inlined_call_operand.vmem [shape: f32[1,2048], index: 0, kind: input, shape index: {}]   ;;  %s115_s1 = inlined_call_operand.vmem [shape: f32[1,2048], index: 1, kind: output, shape index: {}]  }
   0x1   :  { %v95_v0 = vld [vmem:[%s114_s0] sm:$0xff]  ;;  %v100_v1 = vld [vmem:[%s114_s0 + $0x8] sm:$0xff] }
   0x2   :  { %v10_v2 = vand.u32 2147483647, %v95_v0  ;;  %v11_v3 = vand.u32 2147483647, %v100_v1  ;;  %vm20_vm0 = vcmp.ge.f32.partialorder %v95_v0, 0.0  ;;  %vm21_vm1 = vcmp.ge.f32.partialorder %v100_v1, 0.0 }
   0x4   :  { %v12_v4 = vsub.f32 0.0, %v10_v2  ;;  %v13_v5 = vsub.f32 0.0, %v11_v3 }
   0x6   :  { %v14_v6 = vmul.f32 1.442695, %v12_v4  ;;  %v16_v7 = vmul.f32 1.442695, %v13_v5 }
   0x8   :  { %74 = vpow2.f32 %v14_v6 }
   0x9   :  { %76 = vpow2.f32 %v16_v7 }
   0xe   :  { %v75_v8 = vpop.eup %74 }
   0xf   :  { %v77_v9 = vpop.eup %76  ;;  %v18_v10 = vmul.f32 %v75_v8, %v75_v8  ;;  %v22_v11 = vadd.f32 %v75_v8, %v75_v8 }
  0x10   :  { %v19_v12 = vmul.f32 %v77_v9, %v77_v9  ;;  %v23_v13 = vadd.f32 %v77_v9, %v77_v9 }
  0x11   :  { %v24_v14 = vadd.f32 1.0, %v22_v11  ;;  %v26_v15 = vadd.f32 %v22_v11, %v18_v10  ;;  %v30_v16 = vadd.f32 %v18_v10, %v18_v10 }
  0x12   :  { %v25_v17 = vadd.f32 1.0, %v23_v13  ;;  %v27_v18 = vadd.f32 %v23_v13, %v19_v12  ;;  %v31_v19 = vadd.f32 %v19_v12, %v19_v12 }
  0x13   :  { %v28_v20 = vsel %vm20_vm0, %v24_v14, %v26_v15  ;;  %v32_v21 = vsel %vm20_vm0, %v30_v16, 2.0 }
  0x14   :  { %v34_v22 = vadd.f32 %v32_v21, %v28_v20  ;;  %v29_v23 = vsel %vm21_vm1, %v25_v17, %v27_v18  ;;  %v33_v24 = vsel %vm21_vm1, %v31_v19, 2.0 }
  0x15   :  { %v35_v25 = vadd.f32 %v33_v24, %v29_v23 }
  0x16   :  { %78 = vrcp.f32 %v34_v22  ;;  %vm41_vm2 = vweird.f32 %v34_v22  ;;  %v47_v29 = vand.u32 2147483648, %v34_v22  ;;  %v45_v32 = vand.u32 2147483647, %v34_v22 }
  0x17   :  { %80 = vrcp.f32 %v35_v25  ;;  %v62_v33 = vand.u32 2147483648, %v35_v25  ;;  %vm56_vm4 = vweird.f32 %v35_v25  ;;  %v60_v35 = vand.u32 2147483647, %v35_v25 }
  0x18   :  { %v48_v37 = vor.u32 1.1754944e-38, %v47_v29  ;;  %vm46_vm7 = vcmp.eq.f32.partialorder %v45_v32, 8.507059e+37 }
  0x19   :  { %v63_v40 = vor.u32 1.1754944e-38, %v62_v33  ;;  %vm61_vm9 = vcmp.eq.f32.partialorder %v60_v35, 8.507059e+37 }
  0x1c   :  { %v79_v26 = vpop.eup %78 }
  0x1d   :  { %v81_v27 = vpop.eup %80  ;;  %v37_v28 = vmul.f32 %v79_v26, %v34_v22  ;;  %vm42_vm3 = vweird.f32 %v79_v26 }
  0x1e   :  { %v52_v30 = vmul.f32 %v81_v27, %v35_v25  ;;  %vm57_vm5 = vweird.f32 %v81_v27  ;;  %vm43_vm6 = vmor %vm41_vm2, %vm42_vm3 }
  0x1f   :  { %v38_v31 = vsub.f32 1.0, %v37_v28  ;;  %vm58_vm8 = vmor %vm56_vm4, %vm57_vm5 }
  0x20   :  { %v53_v34 = vsub.f32 1.0, %v52_v30 }
  0x21   :  { %v39_v36 = vmul.f32 %v79_v26, %v38_v31 }
  0x22   :  { %v54_v38 = vmul.f32 %v81_v27, %v53_v34 }
  0x23   :  { %v40_v39 = vadd.f32 %v79_v26, %v39_v36 }
  0x24   :  { %v55_v41 = vadd.f32 %v81_v27, %v54_v38 }
  0x25   :  { %v44_v42 = vsel %vm43_vm6, %v79_v26, %v40_v39 }
  0x26   :  { %v49_v43 = vsel %vm46_vm7, %v48_v37, %v44_v42  ;;  %v59_v44 = vsel %vm58_vm8, %v81_v27, %v55_v41 }
  0x27   :  { %v50_v45 = vmul.f32 %v49_v43, %v28_v20  ;;  %v64_v46 = vsel %vm61_vm9, %v63_v40, %v59_v44 }
  0x28   :  { %v65_v47 = vmul.f32 %v64_v46, %v29_v23 }
  0x29   :  { %v66_v48 = vmul.f32 %v50_v45, %v95_v0 }
  0x2a   :  { %v67_v49 = vmul.f32 %v65_v47, %v100_v1 }
  0x2b   :  { %68 = vst [vmem:[%s115_s1] sm:$0xff] %v66_v48 }
  0x2c   :  { %69 = vst [vmem:[%s115_s1 + $0x8] sm:$0xff] %v67_v49 }

</bundles_post_ra>
